<compile_context>
chip_gen: v5e
topology: v5e:2x2
jax: 0.10.0
libtpu: 0.0.40
codegen_flags: <defaults>
</compile_context>

<pallas_src>
import functools

import jax
import jax.numpy as jnp
from jax.experimental import pallas as pl
from jax.experimental.pallas import tpu as pltpu


def _dvq_kernel(x_ref, e_ref, hesq_ref, z_ref, argmin_ref, loss_ref, *,
                n_valid, tile_n, distance_dtype):
    """One (split, row-tile) grid step."""
    n_idx = pl.program_id(1)

    x = x_ref[...]                  # (TN, D) f32: rows of the current split
    e = e_ref[0]                    # (K, D)  f32: codebook (VMEM-resident)
    half_esq = hesq_ref[0]          # (1, K)  f32: 0.5 * |e_k|^2 (precomputed)

    # argmin_k |x - e_k|^2 == argmax_k (x.e_k - 0.5|e_k|^2): the -2 scale and
    # the per-row |x|^2 term are folded out of the hot loop.
    xe = jax.lax.dot_general(
        x.astype(distance_dtype), e.astype(distance_dtype),
        (((1,), (1,)), ((), ())),
        preferred_element_type=jnp.float32)                          # (TN, K) on MXU
    score = xe - half_esq                                            # (TN, K)

    # First-index tie-break (torch.min semantics) via the iota-min trick.
    max_score = jnp.max(score, axis=1, keepdims=True)                # (TN, 1)
    k_iota = jax.lax.broadcasted_iota(jnp.int32, score.shape, 1)     # (TN, K)
    big = jnp.int32(2 ** 31 - 1)
    argm = jnp.min(jnp.where(score >= max_score, k_iota, big),
                   axis=1, keepdims=True)                            # (TN, 1) int32

    # Gather codebook rows with a one-hot matmul (exact in f32).
    one_hot = (k_iota == argm).astype(jnp.float32)                   # (TN, K)
    z = jnp.dot(one_hot, e, preferred_element_type=jnp.float32)      # (TN, D)

    z_ref[...] = z                       # lane-dense (TN, D) store
    argmin_ref[...] = argm[None, :, :]   # (1, TN, 1) store (tiny vs Z traffic)
    # TODO(synk): a lane-dense (1, TN) argmin store would cut masked-vst
    # pressure on v5e but requires an in-kernel (TN,1)->(1,TN) relayout of
    # comparable XLU cost; intentionally kept in the proven layout.

    # Commitment loss without materializing (x - z):
    #   sum_d (x - z)^2 = |x|^2 + |e_k*|^2 - 2 x.e_k* = |x|^2 - 2 * max_score
    # This breaks the loss dependency on the one-hot gather matmul. Padded tail
    # rows must be masked (x is zero there but -2*max_score is not).
    row = n_idx * tile_n + jax.lax.broadcasted_iota(jnp.int32, (x.shape[0], 1), 0)
    per_row = jnp.sum(x * x, axis=1, keepdims=True) - 2.0 * max_score   # (TN, 1)
    partial = jnp.sum(jnp.where(row < n_valid, per_row, 0.0))
    # Per-(split, tile) partial sum -> no grid-carried accumulator, so both
    # grid axes stay "parallel" (matters for v7x's 2 TensorCores).
    loss_ref[...] = jnp.full(loss_ref.shape, partial, dtype=jnp.float32)


_VMEM_BUDGET_BYTES = 36 * 1024 * 1024   # conservative: fits v7x's 64 MiB physical VMEM
_TILE_N_CAP = 2048                      # big tiles amortize ~0.35us per-grid-step cost


def _derive_tiling(N, K, D):
    """Largest padded row tile whose VMEM footprint stays within budget."""
    # Resident: codebook (+ 0.5|e|^2), at most 2 pipeline buffers.
    cb_bytes = 2 * (K * D + 128) * 4
    # Per row: X + Z double-buffered blocks, ~3 live (row, K) f32 temporaries
    # (score / iota / one-hot) and the argmin column.
    per_row_bytes = 2 * 2 * D * 4 + 3 * K * 4 + 2 * 4
    avail = max(_VMEM_BUDGET_BYTES - cb_bytes, 64 * per_row_bytes)
    t = min(_TILE_N_CAP, avail // per_row_bytes)
    t = (t // 128) * 128 if t >= 128 else max(8, (t // 8) * 8)
    if N <= t:
        return N, N                          # single tile, no padding
    n_pad = ((N + t - 1) // t) * t           # pad-and-mask (no divisor search)
    return t, n_pad


def dvq_forward(X, E, *, beta=0.25, distance_in_bf16=False):
    """X: (N, S*D) f32, E: (S, K, D) f32 -> dict(Z_embs, loss, argmins)."""
    N, F = X.shape
    S, K, D = E.shape
    assert F == S * D
    # Column-slicing BlockSpecs need the per-split width to be lane-aligned
    # (multiple of 128) unless a single split covers the full width.
    assert S == 1 or D % 128 == 0, (
        "dvq_forward: dim_codebook must be a multiple of 128 for lane-aligned "
        "column slicing")
    # TODO(synk): add a relayout fallback path for non-128-multiple dim_codebook.

    tile_n, n_pad = _derive_tiling(N, K, D)
    n_tiles = n_pad // tile_n
    Xp = X if n_pad == N else jnp.pad(X, ((0, n_pad - N), (0, 0)))

    # Hoisted out of the kernel: 0.5*|e_k|^2, resident across all N tiles.
    half_Esq = 0.5 * jnp.sum(E * E, axis=-1)[:, None, :]          # (S, 1, K)

    # Single-buffer the N-invariant codebook block only when it is large
    # (saves K*D*4 bytes of VMEM on v7x at the cost of one bubble per split).
    cb_bytes = K * D * 4
    single_buffer_cb = cb_bytes > (4 << 20)
    cb_kwargs = {"pipeline_mode": pl.Buffered(1)} if single_buffer_cb else {}
    cb_bufs = 1 if single_buffer_cb else 2
    # TODO(synk): for tiny codebooks with short per-tile compute, sweeping
    # pl.Buffered(3) on the X spec can hide exposed HBM latency.

    # vmem_limit derived from the actual footprint instead of a flat constant.
    footprint = (cb_bufs * cb_bytes + 2 * K * 4
                 + 2 * 2 * tile_n * D * 4            # X + Z double-buffered
                 + 3 * tile_n * K * 4                # in-kernel (TN, K) temporaries
                 + 2 * tile_n * 4 + 2 * 128 * 4)     # argmin + loss blocks
    vmem_limit = int(min(max(footprint * 3 // 2 + (8 << 20), 16 << 20), 56 << 20))

    dist_dtype = jnp.bfloat16 if distance_in_bf16 else jnp.float32
    kernel = functools.partial(_dvq_kernel, n_valid=N, tile_n=tile_n,
                               distance_dtype=dist_dtype)

    z, argm, loss_parts = pl.pallas_call(
        kernel,
        out_shape=(
            jax.ShapeDtypeStruct((n_pad, S * D), jnp.float32),    # Z, X layout
            jax.ShapeDtypeStruct((S, n_pad, 1), jnp.int32),       # argmins
            jax.ShapeDtypeStruct((S, n_tiles, 128), jnp.float32), # loss partials
        ),
        grid_spec=pltpu.PrefetchScalarGridSpec(
            num_scalar_prefetch=0,
            grid=(S, n_tiles),                                    # split outer, rows inner
            in_specs=[
                pl.BlockSpec((tile_n, D), lambda s, n: (n, s)),           # X cols of s
                pl.BlockSpec((1, K, D), lambda s, n: (s, 0, 0), **cb_kwargs),
                pl.BlockSpec((1, 1, K), lambda s, n: (s, 0, 0)),          # 0.5|e|^2
            ],
            out_specs=[
                pl.BlockSpec((tile_n, D), lambda s, n: (n, s)),           # Z cols of s
                pl.BlockSpec((1, tile_n, 1), lambda s, n: (s, n, 0)),
                pl.BlockSpec((1, 1, 128), lambda s, n: (s, n, 0)),        # loss partial
            ],
        ),
        compiler_params=pltpu.CompilerParams(
            dimension_semantics=("parallel", "parallel"),
            vmem_limit_bytes=vmem_limit,
        ),
    )(Xp, E, half_Esq)

    Z = z[:N] if n_pad != N else z
    argmins = jnp.transpose(argm[:, :N, 0], (1, 0))          # (N, S) int32
    total_loss = jnp.sum(loss_parts[:, :, 0]) * (beta / N)   # global-batch mean
    return {"Z_embs": Z, "loss": total_loss, "argmins": argmins}


def _dvq_reference(X, E, *, beta=0.25):
    """Pure-JAX reference mirroring the PyTorch forward (EMA branch)."""
    N = X.shape[0]
    S, K, D = E.shape
    Xs = X.reshape(N, S, D)
    Zs, losses, args = [], [], []
    for s in range(S):
        x = Xs[:, s, :]
        e = E[s]
        dist = (jnp.sum(x * x, 1, keepdims=True)
                + jnp.sum(e * e, 1)[None, :]
                - 2.0 * x @ e.T)
        a = jnp.argmin(dist, axis=1)
        z = e[a]
        losses.append(beta * jnp.mean(jnp.sum((x - z) ** 2, axis=1)))
        Zs.append(z)
        args.append(a)
    return {"Z_embs": jnp.concatenate(Zs, axis=1),
            "loss": jnp.sum(jnp.stack(losses)),
            "argmins": jnp.stack(args, axis=1)}


if __name__ == "__main__":
    # Small shapes consistent with the module:
    #   batch N=64, num_splits S=2, dim_codebook D=128, size_codebook K=128.
    N, S, D, K = 64, 2, 128, 128
    beta = 0.25

    key = jax.random.PRNGKey(0)
    kx, ke = jax.random.split(key)
    X = jax.random.normal(kx, (N, S * D), dtype=jnp.float32)
    # nn.Embedding weight init ~ N(0, 1), deterministic here.
    E = jax.random.normal(ke, (S, K, D), dtype=jnp.float32)

    out = dvq_forward(X, E, beta=beta)
    jax.block_until_ready(out)

    ref = _dvq_reference(X, E, beta=beta)
    assert out["Z_embs"].shape == (N, S * D)
    assert out["argmins"].shape == (N, S)
    assert jnp.allclose(out["Z_embs"], ref["Z_embs"], atol=1e-5)
    assert jnp.array_equal(out["argmins"], ref["argmins"].astype(jnp.int32))
    # Loss is computed via the algebraic identity |x|^2 - 2*max_score; allow a
    # slightly looser tolerance than the direct (x - z)^2 path.
    assert jnp.allclose(out["loss"], ref["loss"], rtol=1e-4, atol=1e-4)

    print("KERNEL_OK")
</pallas_src>

<mosaic_0001>
module attributes {stable_mosaic.version = 11 : i64} {
  func.func @_dvq_kernel(%arg0: i32, %arg1: i32, %arg2: memref<64x128xf32, #tpu.memory_space<vmem>>, %arg3: memref<1x128x128xf32, #tpu.memory_space<vmem>>, %arg4: memref<1x1x128xf32, #tpu.memory_space<vmem>>, %arg5: memref<64x128xf32, #tpu.memory_space<vmem>>, %arg6: memref<1x64x1xi32, #tpu.memory_space<vmem>>, %arg7: memref<1x1x128xf32, #tpu.memory_space<vmem>>) attributes {dimension_semantics = [#tpu.dimension_semantics<parallel>, #tpu.dimension_semantics<parallel>], iteration_bounds = array<i64: 2, 1>, scalar_prefetch = 0 : i64, scratch_operands = 0 : i64, tpu.core_type = #tpu.core_type<tc>, window_params = [{transform_indices = @transform_0, window_bounds = array<i64: 64, 128>}, {transform_indices = @transform_1, window_bounds = array<i64: 1, 128, 128>}, {transform_indices = @transform_2, window_bounds = array<i64: 1, 1, 128>}, {transform_indices = @transform_3, window_bounds = array<i64: 64, 128>}, {transform_indices = @transform_4, window_bounds = array<i64: 1, 64, 1>}, {transform_indices = @transform_5, window_bounds = array<i64: 1, 1, 128>}]} {
    %c0 = arith.constant 0 : index
    %c0_0 = arith.constant 0 : index
    %0 = vector.load %arg2[%c0, %c0_0] : memref<64x128xf32, #tpu.memory_space<vmem>>, vector<64x128xf32>
    %c0_1 = arith.constant 0 : index
    %c0_2 = arith.constant 0 : index
    %c0_3 = arith.constant 0 : index
    %1 = vector.load %arg3[%c0_1, %c0_2, %c0_3] : memref<1x128x128xf32, #tpu.memory_space<vmem>>, vector<1x128x128xf32>
    %2 = vector.shape_cast %1 : vector<1x128x128xf32> to vector<128x128xf32>
    %c0_4 = arith.constant 0 : index
    %c0_5 = arith.constant 0 : index
    %c0_6 = arith.constant 0 : index
    %3 = vector.load %arg4[%c0_4, %c0_5, %c0_6] : memref<1x1x128xf32, #tpu.memory_space<vmem>>, vector<1x1x128xf32>
    %4 = vector.shape_cast %3 : vector<1x1x128xf32> to vector<1x128xf32>
    %cst = arith.constant dense<0.000000e+00> : vector<64x128xf32>
    %5 = tpu.matmul %0, %2, %cst {dimension_numbers = #tpu.dot_dimension_numbers<[1], [1], [0], [0], [0, 0, 1, 0], [], []>} : vector<64x128xf32>, vector<128x128xf32>, vector<64x128xf32> -> vector<64x128xf32>
    %6 = vector.broadcast %4 : vector<1x128xf32> to vector<64x128xf32>
    %7 = arith.subf %5, %6 : vector<64x128xf32>
    %cst_7 = arith.constant dense<0xFF800000> : vector<64xf32>
    %8 = vector.multi_reduction <maximumf>, %7, %cst_7 [1] : vector<64x128xf32> to vector<64xf32>
    %9 = vector.shape_cast %8 : vector<64xf32> to vector<64x1xf32>
    %10 = tpu.iota {dimensions = array<i32: 1>} : vector<64x128xi32>
    %11 = vector.broadcast %9 : vector<64x1xf32> to vector<64x128xf32>
    %12 = arith.cmpf oge, %7, %11 : vector<64x128xf32>
    %c2147483647_i32 = arith.constant 2147483647 : i32
    %13 = vector.broadcast %c2147483647_i32 : i32 to vector<64x128xi32>
    %14 = arith.select %12, %10, %13 : vector<64x128xi1>, vector<64x128xi32>
    %cst_8 = arith.constant dense<2147483647> : vector<64xi32>
    %15 = vector.multi_reduction <minsi>, %14, %cst_8 [1] : vector<64x128xi32> to vector<64xi32>
    %16 = vector.shape_cast %15 : vector<64xi32> to vector<64x1xi32>
    %17 = vector.broadcast %16 : vector<64x1xi32> to vector<64x128xi32>
    %18 = arith.cmpi eq, %10, %17 : vector<64x128xi32>
    %19 = arith.extui %18 : vector<64x128xi1> to vector<64x128xi32>
    %20 = arith.sitofp %19 : vector<64x128xi32> to vector<64x128xf32>
    %cst_9 = arith.constant dense<0.000000e+00> : vector<64x128xf32>
    %21 = tpu.matmul %20, %2, %cst_9 {dimension_numbers = #tpu.dot_dimension_numbers<[1], [0], [0], [1], [0, 0, 1, 1], [], []>} : vector<64x128xf32>, vector<128x128xf32>, vector<64x128xf32> -> vector<64x128xf32>
    %c0_10 = arith.constant 0 : index
    %c0_11 = arith.constant 0 : index
    %22 = vector.load %arg5[%c0_10, %c0_11] : memref<64x128xf32, #tpu.memory_space<vmem>>, vector<64x128xf32>
    tpu.vector_store %arg5[%c0_10, %c0_11], %21 {strides = array<i32>} : memref<64x128xf32, #tpu.memory_space<vmem>>, vector<64x128xf32>,
    %23 = vector.shape_cast %16 : vector<64x1xi32> to vector<1x64x1xi32>
    %c0_12 = arith.constant 0 : index
    %c0_13 = arith.constant 0 : index
    %c0_14 = arith.constant 0 : index
    %24 = vector.load %arg6[%c0_12, %c0_13, %c0_14] : memref<1x64x1xi32, #tpu.memory_space<vmem>>, vector<1x64x1xi32>
    tpu.vector_store %arg6[%c0_12, %c0_13, %c0_14], %23 {strides = array<i32>} : memref<1x64x1xi32, #tpu.memory_space<vmem>>, vector<1x64x1xi32>,
    %c64_i32 = arith.constant 64 : i32
    %25 = arith.muli %arg1, %c64_i32 : i32
    %26 = tpu.iota {dimensions = array<i32: 0>} : vector<64x1xi32>
    %27 = vector.broadcast %25 : i32 to vector<64x1xi32>
    %28 = arith.addi %27, %26 : vector<64x1xi32>
    %29 = arith.mulf %0, %0 : vector<64x128xf32>
    %cst_15 = arith.constant dense<0.000000e+00> : vector<64xf32>
    %30 = vector.multi_reduction <add>, %29, %cst_15 [1] : vector<64x128xf32> to vector<64xf32>
    %31 = vector.shape_cast %30 : vector<64xf32> to vector<64x1xf32>
    %cst_16 = arith.constant 2.000000e+00 : f32
    %32 = vector.broadcast %cst_16 : f32 to vector<64x1xf32>
    %33 = arith.mulf %32, %9 : vector<64x1xf32>
    %34 = arith.subf %31, %33 : vector<64x1xf32>
    %c64_i32_17 = arith.constant 64 : i32
    %35 = vector.broadcast %c64_i32_17 : i32 to vector<64x1xi32>
    %36 = arith.cmpi slt, %28, %35 : vector<64x1xi32>
    %cst_18 = arith.constant 0.000000e+00 : f32
    %37 = vector.broadcast %cst_18 : f32 to vector<64x1xf32>
    %38 = arith.select %36, %34, %37 : vector<64x1xi1>, vector<64x1xf32>
    %39 = vector.shape_cast %38 : vector<64x1xf32> to vector<1x64x1xf32>
    %cst_19 = arith.constant dense<0.000000e+00> : vector<1xf32>
    %40 = vector.multi_reduction <add>, %39, %cst_19 [1, 2] : vector<1x64x1xf32> to vector<1xf32>
    %41 = vector.shape_cast %40 : vector<1xf32> to vector<1x1x1xf32>
    %42 = vector.extract %41[0, 0, 0] : f32 from vector<1x1x1xf32>
    %43 = vector.broadcast %42 : f32 to vector<1x1x128xf32>
    %c0_20 = arith.constant 0 : index
    %c0_21 = arith.constant 0 : index
    %c0_22 = arith.constant 0 : index
    %44 = vector.load %arg7[%c0_20, %c0_21, %c0_22] : memref<1x1x128xf32, #tpu.memory_space<vmem>>, vector<1x1x128xf32>
    tpu.vector_store %arg7[%c0_20, %c0_21, %c0_22], %43 {strides = array<i32>} : memref<1x1x128xf32, #tpu.memory_space<vmem>>, vector<1x1x128xf32>,
    return
  }
  func.func @transform_0(%arg0: i32, %arg1: i32) -> (i32, i32) {
    %c0_i32 = arith.constant 0 : i32
    return %arg1, %arg0 : i32, i32
  }
  func.func @transform_1(%arg0: i32, %arg1: i32) -> (i32, i32, i32) {
    %c0_i32 = arith.constant 0 : i32
    %c0_i32_0 = arith.constant 0 : i32
    %c0_i32_1 = arith.constant 0 : i32
    return %arg0, %c0_i32, %c0_i32_0 : i32, i32, i32
  }
  func.func @transform_2(%arg0: i32, %arg1: i32) -> (i32, i32, i32) {
    %c0_i32 = arith.constant 0 : i32
    %c0_i32_0 = arith.constant 0 : i32
    %c0_i32_1 = arith.constant 0 : i32
    return %arg0, %c0_i32, %c0_i32_0 : i32, i32, i32
  }
  func.func @transform_3(%arg0: i32, %arg1: i32) -> (i32, i32) {
    %c0_i32 = arith.constant 0 : i32
    return %arg1, %arg0 : i32, i32
  }
  func.func @transform_4(%arg0: i32, %arg1: i32) -> (i32, i32, i32) {
    %c0_i32 = arith.constant 0 : i32
    %c0_i32_0 = arith.constant 0 : i32
    return %arg0, %arg1, %c0_i32 : i32, i32, i32
  }
  func.func @transform_5(%arg0: i32, %arg1: i32) -> (i32, i32, i32) {
    %c0_i32 = arith.constant 0 : i32
    %c0_i32_0 = arith.constant 0 : i32
    return %arg0, %arg1, %c0_i32 : i32, i32, i32
  }
}

</mosaic_0001>

<bundles_post_ra>
// kernel: tpu_custom_call.1
= control target key start
LH: loop header
LB: loop body
LE: loop exit
PB: predicated region body
PF: predicated region fallthrough
CT: control target
= control target key end

     0   :  { %s1810_s0 = inlined_call_operand.hbm [shape: f32[64,256], index: 0, kind: input, shape index: {}]   ;;  %s1811_s1 = inlined_call_operand.hbm [shape: f32[2,128,128], index: 1, kind: input, shape index: {}]   ;;  %s1812_s2 = inlined_call_operand.hbm [shape: f32[2,1,128], index: 2, kind: input, shape index: {}]   ;;  %s1813_s3 = inlined_call_operand.hbm [shape: f32[64,256], index: 3, kind: output, shape index: {0}]   ;;  %s1814_s4 = inlined_call_operand.vmem [shape: s32[2,64,1], index: 4, kind: output, shape index: {1}]   ;;  %s1815_s5 = inlined_call_operand.hbm [shape: f32[2,1,128], index: 5, kind: output, shape index: {2}]  }
   0x1   :  { %1824 = sst [smem:[#allocation21_spill]] %s1811_s1 }
   0x2   :  { %1825 = sst [smem:[#allocation22_spill]] %s1813_s3 }
   0x3   :  { %1826 = sst [smem:[#allocation23_spill]] %s1815_s5 }
   0x4   :  { %11 = vsyncpa [#allocation3], 0 }
   0x5   :  { %13 = vsyncpa [#allocation3 + $0x1], 0 }
   0x6   :  { %14 = vsyncpa [#allocation6], 0 }
   0x7   :  { %16 = vsyncpa [#allocation6 + $0x1], 0 }
   0x8   :  { %17 = vsyncpa [#allocation4], 0 }
   0x9   :  { %19 = vsyncpa [#allocation4 + $0x1], 0 }
   0xa   :  { %20 = vsyncpa [#allocation10], 0 }
   0xb   :  { %22 = vsyncpa [#allocation10 + $0x1], 0  ;;  %s1422_s18 = smov 0   ;;  %s1424_s19 = smov 0  }
   0xc   :  { %s1426_s20 = smov 0   ;;  %s1428_s21 = smov 0  }
   0xd   :  { %s1430_s22 = smov 0   ;;  %s1432_s23 = smov 0  }
   0xe LB: > { %1827 = sst [smem:[#allocation15_spill]] %s1363_s18  ;;  %s1453_s24 = sadd.s32 4294967295, %s1383_s23   ;;  %s1383_s23 = sphi %s1432_s23, %s28_s23   ;;  %s1379_s22 = sphi %s1430_s22, %s1851_s22   ;;  %s1375_s21 = sphi %s1428_s21, %s1850_s21   ;;  %s1371_s20 = sphi %s1426_s20, %s1846_s20   ;;  %s1367_s19 = sphi %s1424_s19, %s1849_s19   ;;  %s1363_s18 = sphi %s1422_s18, %s1848_s18  }
   0xf   : > { %1828 = sst [smem:[#allocation16_spill]] %s1371_s20  ;;  %s1020_s25 = sadd.s32 4294967294, %s1383_s23  }
  0x10   : > { %1829 = sst [smem:[#allocation17_spill]] %s1383_s23  ;;  %s40_s26 = sadd.s32 1, %s1379_s22 }
  0x11   : > { %s49_s27 = sadd.s32 1, %s1371_s20  ;;  %p42_p0 = scmp.ge.s32.totalorder %s40_s26, 2 }
  0x12   : > { %p56_p1 = scmp.ne.s32.totalorder %s1371_s20, %s1367_s19  ;;  %p57_p2 = scmp.eq.s32.totalorder %s1383_s23, 0 }
  0x13   : > { %p62_p3 = scmp.ne.s32.totalorder %s1367_s19, %s1363_s18  ;;  %s1853_s26 = smov (%p42_p0, %s40_s26), 0 }
  0x14   : > { %1830 = sst [smem:[#allocation18_spill]] %s1853_s26  ;;  %p1465_p4 = por %p57_p2, %p56_p1 }
  0x15   : > { %p63_p5 = scmp.eq.s32.totalorder %s1453_s24, 0  ;;  %s45_s29 = ssub.s32 %s1379_s22, %s1853_s26 }
  0x16   : > { %p140_p6 = scmp.eq.s32.totalorder %s1453_s24, 1  ;;  %p47_p7 = scmp.eq.s32.totalorder %s45_s29, 0 }
  0x17   : > { %p1473_p8 = por %p63_p5, %p62_p3  ;;  %p146_p10 = scmp.eq.s32.totalorder %s1020_s25, 1 }
  0x18   : > { %p1477_p9 = por %p140_p6, %p56_p1  ;;  %p1022_p12 = scmp.ge.s32.totalorder %s1383_s23, 2 }
  0x19   : > { %s1482_s7 = scalar_select %p47_p7, %s1371_s20, %s49_s27  }
  0x1a   : > { %p1484_p11 = por %p146_p10, %p62_p3  ;;  %p1117_p13 = scmp.lt.s32.totalorder %s1383_s23, 2 }
  0x1b   : > { %1834 = sst [smem:[#allocation19_spill]] %s1482_s7  ;;  %s1491_s9 = sand.u32 1, %s1371_s20  }
  0x1c   : > { %s1835_s8 = scalar_select %p1484_p11, 1, 0 }
  0x1d   : > { %p1495_p0 = pnand %p1117_p13, %p1465_p4  ;;  %s246_s11 = sand.u32 1, %s1383_s23  }
  0x1e   : > { %1836 = sst [smem:[#allocation20_spill]] %s1835_s8  ;;  %s1025_s12 = sshll.u32 %s1491_s9, 7 }
  0x1f   : > { %s1054_s13 = sshll.u32 %s1379_s22, 7  ;;  %s250_s14 = scalar_lea.vmem [#allocation5], %s1025_s12 }
  0x20   : > { %s258_s15 = sshll.u32 %s250_s14, 4  ;;  %s1838_s1 = sld [smem:[#allocation21_spill]]  ;;  %s259_s15 = int_to_ptr.vmem [resolvable:$true] %s258_s15 }
  0x21   : > { %p1028_p1 = scmp.ge.s32.totalorder %s1383_s23, 1  ;;  %p283_p2 = scmp.lt.s32.totalorder %s1383_s23, 3 }
  0x22   : > { %s247_s28 = scalar_lea.sflag [#allocation6], %s246_s11  ;;  %s1385_s29 = smov 128  }
  0x23   : > { %s1386_s26 = smov 8   ;;  %p1509_p3 = pnand %p1028_p1, %p283_p2 }
  0x24   : > { %s1023_s14 = sshll.u32 %s1491_s9, 6  ;;  %s223_s20 = scalar_lea.sflag [#allocation3], %s1491_s9 }
  0x25   : > { %s226_s7 = scalar_lea.vmem [#allocation2], %s1023_s14  ;;  %s1387_s23 = smov 256  }
  0x26   : > { %s255_s25 = scalar_lea.hbm %s1838_s1, %s1054_s13  ;;  %s1024_s13 = sshll.u32 %s1379_s22, 3 }
  0x27   : > { %s256_s27 = sshll.u32 %s255_s25, 4  ;;  %s233_s25 = scalar_lea.hbm %s1810_s0, %s1024_s13  ;;  %s257_s27 = int_to_ptr.hbm [resolvable:$true] %s256_s27 }
  0x28   : > { %1106 = dma.hbm_to_vmem [thread:$0]  (!%p1495_p0), %s257_s27, 2048, %s259_s15, %s247_s28, %s1385_s29, %s1385_s29, %s1386_s26  }
  0x29   : > { %s234_s1 = sshll.u32 %s233_s25, 4  ;;  %s236_s11 = sshll.u32 %s226_s7, 4  ;;  %s235_s1 = int_to_ptr.hbm [resolvable:$true] %s234_s1  ;;  %s237_s11 = int_to_ptr.vmem [resolvable:$true] %s236_s11 }
  0x2a   : > { %1103 = dma.hbm_to_vmem [thread:$0]  (!%p1495_p0), %s235_s1, 1024, %s237_s11, %s223_s20, %s1387_s23, %s1385_s29, %s1386_s26  }
  0x2b   : > { %s274_s8 = scalar_lea.hbm %s1812_s2, %s1379_s22  ;;  %s271_s18 = scalar_lea.vmem [#allocation7], %s1491_s9 }
  0x2c   : > { %s278_s5 = sshll.u32 %s271_s18, 4  ;;  %s276_s3 = sshll.u32 %s274_s8, 4  ;;  %s279_s5 = int_to_ptr.vmem [resolvable:$true] %s278_s5  ;;  %s277_s3 = int_to_ptr.hbm [resolvable:$true] %s276_s3 }
  0x2d   : > { %1109 = dma.hbm_to_vmem [thread:$0]  (!%p1495_p0), %s277_s3, 16, %s279_s5, %s247_s28  }
  0x2e   : > { %287 = sbr.rel (%p1509_p3) target bundleno = 940 (0x3ac), region = 32  ;;  %s1531_s7 = sand.u32 (!%p1509_p3), 1, %s1367_s19  }
  0x2f   : > { %s1029_s1 = sshll.u32 (!%p1509_p3), %s1531_s7, 6  ;;  %s290_s20 = scalar_lea.sflag (!%p1509_p3), [#allocation3], %s1531_s7 }
  0x30   : > { %s1537_s23 = scalar_lea.vmem (!%p1509_p3), [#allocation2], %s1029_s1 }
  0x33   : > { %1346 = dma.done.wait (%p1473_p8), %s290_s20, 1024  }
  0x34   : > { %1348 = vsyncadd (%p1473_p8), %s290_s20, 4294966272  ;;  %s299_s3 = sand.u32 1, %s1453_s24   ;;  %s1030_s5 = sshll.u32 %s1531_s7, 7 }
  0x35   : > { %s300_s18 = scalar_lea.sflag [#allocation6], %s299_s3  ;;  %s1545_s26 = scalar_lea.vmem [#allocation5], %s1030_s5 }
  0x36   : > { %1350 = dma.done.wait (%p1473_p8), %s300_s18, 2064  }
  0x37   : > { %1352 = vsyncadd (%p1473_p8), %s300_s18, 4294965232  ;;  %v397_v0 = vld [vmem:[%s1545_s26 + $0x78] sm:$0xff]  ;;  %v396_v1 = vld [vmem:[%s1545_s26 + $0x70] sm:$0xff]  ;;  %s312_s24 = scalar_lea.vmem [#allocation7], %s1531_s7  ;;  %v467_v39 = vlaneseq  ;;  %p365_p4 = scmp.lt.s32.totalorder %s1375_s21, 1  ;;  %vm670_vm15 = vcmask 7168  }
  0x38   : > { %399 = vmatpush.xpose.msra.mxu0 %v397_v0  ;;  %1056 = vmatpush.xpose.msra.mxu2 %v397_v0  ;;  %v395_v2 = vld [vmem:[%s1545_s26 + $0x68] sm:$0xff]  ;;  %v394_v3 = vld [vmem:[%s1545_s26 + $0x60] sm:$0xff]  ;;  %v393_v4 = vld [vmem:[%s1545_s26 + $0x58] sm:$0xff]  ;;  %s1726_s29 = scalar_lea.vmem [#allocation8], %s1029_s1  ;;  %s1051_s12 = sshll.u32 %s1375_s21, 3 }
  0x39   : > { %1057 = vmatpush.xpose.msra.mxu3 %v397_v0  ;;  %621 = vmatpush.msra.mxu1 %v397_v0  ;;  %v392_v5 = vld [vmem:[%s1545_s26 + $0x50] sm:$0xff]  ;;  %v391_v6 = vld [vmem:[%s1545_s26 + $0x48] sm:$0xff]  ;;  %v390_v7 = vld [vmem:[%s1545_s26 + $0x40] sm:$0xff]  ;;  %v1602_v40 = vand.u32 127, %v467_v39  ;;  %s366_s30 = scalar_select %p365_p4, %s1375_s21, 1 }
  0x3a   : > { %v389_v8 = vld [vmem:[%s1545_s26 + $0x38] sm:$0xff]  ;;  %v388_v9 = vld [vmem:[%s1545_s26 + $0x30] sm:$0xff]  ;;  %v387_v10 = vld [vmem:[%s1545_s26 + $0x28] sm:$0xff]  ;;  %s1840_s16 = sld [smem:[#allocation22_spill]]  ;;  %s808_s25 = sshll.u32 %s1726_s29, 4  ;;  %s809_s25 = int_to_ptr.vmem [resolvable:$true] %s808_s25 }
  0x3b   : > { %622 = vmatpush.msra.mxu1 %v396_v1  ;;  %v386_v11 = vld [vmem:[%s1545_s26 + $0x20] sm:$0xff]  ;;  %v385_v12 = vld [vmem:[%s1545_s26 + $0x18] sm:$0xff]  ;;  %v384_v13 = vld [vmem:[%s1545_s26 + $0x10] sm:$0xff]  ;;  %s1055_s8 = sshll.u32 %s366_s30, 6  ;;  %s781_s15 = scalar_lea.sflag [#allocation4], %s1531_s7 }
  0x3c   : > { %400 = vmatpush.xpose.msra.mxu0 %v396_v1  ;;  %1058 = vmatpush.xpose.msra.mxu2 %v396_v1  ;;  %v383_v14 = vld [vmem:[%s1545_s26 + $0x8] sm:$0xff]  ;;  %v382_v15 = vld [vmem:[%s1545_s26] sm:$0xff]  ;;  %v1581_v19 = vld [vmem:[%s1537_s23 + $0x10] sm:$0xff]  ;;  %s1681_s28 = scalar_lea.vmem %s1814_s4, %s1055_s8 }
  0x3d   : > { %1059 = vmatpush.xpose.msra.mxu3 %v396_v1  ;;  %623 = vmatpush.msra.mxu1 %v395_v2  ;;  %v1569_v16 = vld [vmem:[%s1537_s23] sm:$0xff]  ;;  %v1572_v17 = vld [vmem:[%s1537_s23 + $0x8] sm:$0xff]  ;;  %v1589_v21 = vld [vmem:[%s1537_s23 + $0x18] sm:$0xff] }
  0x3e   : > { %v1575_v18 = vld [vmem:[%s1537_s23 + $0x20] sm:$0xff]  ;;  %v1584_v20 = vld [vmem:[%s1537_s23 + $0x28] sm:$0xff]  ;;  %v1592_v22 = vld [vmem:[%s1537_s23 + $0x30] sm:$0xff] }
  0x3f   : > { %624 = vmatpush.msra.mxu1 %v394_v3  ;;  %v1597_v23 = vld [vmem:[%s1537_s23 + $0x38] sm:$0xff]  ;;  %v1174_v24 = vld [vmem:[%s312_s24] ss:$0 sm:$0xff] }
  0x40   : > { %401 = vmatpush.xpose.msra.mxu0 %v395_v2  ;;  %1060 = vmatpush.xpose.msra.mxu2 %v395_v2  ;;  %s807_s17 = scalar_lea.hbm %s1840_s16, %s1051_s12  ;;  %s1285_s3 = scalar_lea.hbm %s1840_s16, 128 }
  0x41   : > { %1061 = vmatpush.xpose.msra.mxu3 %v395_v2  ;;  %625 = vmatpush.msra.mxu1 %v393_v4  ;;  %s810_s11 = sshll.u32 %s807_s17, 4  ;;  %s811_s11 = int_to_ptr.hbm [resolvable:$true] %s810_s11 }
  0x42   : > { %s1279_s27 = sshra.s32 %s811_s11, 4  ;;  %s1280_s27 = int_to_ptr.hbm [resolvable:$true] %s1279_s27 }
  0x43   : > { %626 = vmatpush.msra.mxu1 %v392_v5  ;;  %s1281_s1 = scalar_lea.hbm %s1280_s27, 64  ;;  %p1286_p8 = scmp.lt.s32.totalorder %s1280_s27, %s1840_s16 }
  0x44   : > { %402 = vmatpush.xpose.msra.mxu0 %v394_v3  ;;  %1062 = vmatpush.xpose.msra.mxu2 %v394_v3  ;;  %p1282_p5 = scmp.ne.s32.totalorder %s1280_s27, %s1281_s1  ;;  %p1287_p10 = scmp.lt.s32.totalorder %s1285_s3, %s1281_s1 }
  0x45   : > { %1063 = vmatpush.xpose.msra.mxu3 %v394_v3  ;;  %627 = vmatpush.msra.mxu1 %v391_v6 }
  0x46   : > { %p1283_p6 = pnand %p1282_p5, %p1477_p9  ;;  %p1288_p13 = por %p1287_p10, %p1286_p8 }
  0x47   : > { %628 = vmatpush.msra.mxu1 %v390_v7 }
  0x48   : > { %403 = vmatpush.xpose.msra.mxu0 %v393_v4  ;;  %1064 = vmatpush.xpose.msra.mxu2 %v393_v4  ;;  %p1284_p7 = pneg %p1283_p6 }
  0x49   : > { %1065 = vmatpush.xpose.msra.mxu3 %v393_v4  ;;  %629 = vmatpush.msra.mxu1 %v389_v8 }
  0x4a   : > { %p1289_p0 = pnand %p1288_p13, %p1284_p7 }
  0x4b   : > { %630 = vmatpush.msra.mxu1 %v388_v9 }
  0x4c   : > { %404 = vmatpush.xpose.msra.mxu0 %v392_v5  ;;  %1066 = vmatpush.xpose.msra.mxu2 %v392_v5 }
  0x4d   : > { %1067 = vmatpush.xpose.msra.mxu3 %v392_v5  ;;  %631 = vmatpush.msra.mxu1 %v387_v10 }
  0x4f   : > { %632 = vmatpush.msra.mxu1 %v386_v11 }
  0x50   : > { %405 = vmatpush.xpose.msra.mxu0 %v391_v6  ;;  %1068 = vmatpush.xpose.msra.mxu2 %v391_v6 }
  0x51   : > { %1069 = vmatpush.xpose.msra.mxu3 %v391_v6  ;;  %633 = vmatpush.msra.mxu1 %v385_v12 }
  0x53   : > { %634 = vmatpush.msra.mxu1 %v384_v13 }
  0x54   : > { %406 = vmatpush.xpose.msra.mxu0 %v390_v7  ;;  %1070 = vmatpush.xpose.msra.mxu2 %v390_v7 }
  0x55   : > { %1071 = vmatpush.xpose.msra.mxu3 %v390_v7  ;;  %635 = vmatpush.msra.mxu1 %v383_v14 }
  0x57   : > { %636 = vmatpush.msra.mxu1 %v382_v15 }
  0x58   : > { %407 = vmatpush.xpose.msra.mxu0 %v389_v8  ;;  %1072 = vmatpush.xpose.msra.mxu2 %v389_v8 }
  0x59   : > { %1073 = vmatpush.xpose.msra.mxu3 %v389_v8 }
  0x5c   : > { %408 = vmatpush.xpose.msra.mxu0 %v388_v9  ;;  %1074 = vmatpush.xpose.msra.mxu2 %v388_v9 }
  0x5d   : > { %1075 = vmatpush.xpose.msra.mxu3 %v388_v9 }
  0x60   : > { %409 = vmatpush.xpose.msra.mxu0 %v387_v10  ;;  %1076 = vmatpush.xpose.msra.mxu2 %v387_v10 }
  0x61   : > { %1077 = vmatpush.xpose.msra.mxu3 %v387_v10 }
  0x64   : > { %410 = vmatpush.xpose.msra.mxu0 %v386_v11  ;;  %1078 = vmatpush.xpose.msra.mxu2 %v386_v11 }
  0x65   : > { %1079 = vmatpush.xpose.msra.mxu3 %v386_v11 }
  0x68   : > { %411 = vmatpush.xpose.msra.mxu0 %v385_v12  ;;  %1080 = vmatpush.xpose.msra.mxu2 %v385_v12 }
  0x69   : > { %1081 = vmatpush.xpose.msra.mxu3 %v385_v12 }
  0x6c   : > { %412 = vmatpush.xpose.msra.mxu0 %v384_v13  ;;  %1082 = vmatpush.xpose.msra.mxu2 %v384_v13 }
  0x6d   : > { %1083 = vmatpush.xpose.msra.mxu3 %v384_v13 }
  0x70   : > { %413 = vmatpush.xpose.msra.mxu0 %v383_v14  ;;  %1084 = vmatpush.xpose.msra.mxu2 %v383_v14 }
  0x71   : > { %1085 = vmatpush.xpose.msra.mxu3 %v383_v14 }
  0x74   : > { %414 = vmatpush.xpose.msra.mxu0 %v382_v15  ;;  %1086 = vmatpush.xpose.msra.mxu2 %v382_v15 }
  0x75   : > { %1087 = vmatpush.xpose.msra.mxu3 %v382_v15 }
  0x77   : > { %415 = vmatmul.f32.vlgmr.msra.gmra.mxu0 %v1569_v16  ;;  %418 = vmatmul.f32.vlgmr.msra.gmra.mxu2 %v1572_v17 }
  0x78   : > { %427 = vmatmul.f32.vlgmr.msra.gmra.mxu3 %v1575_v18 }
  0x7f   : > { %421 = vmatmul.f32.gmra.mxu2 %v1581_v19 }
  0x80   : > { %430 = vmatmul.f32.gmra.mxu3 %v1584_v20 }
  0x87   : > { %424 = vmatmul.f32.gmra.mxu2 %v1589_v21 }
  0x88   : > { %433 = vmatmul.f32.gmra.mxu3 %v1592_v22 }
  0x90   : > { %436 = vmatmul.f32.gmra.mxu3 %v1597_v23 }
  0xf4   : > { %v416_v25 = vpop.f32.mrf.mxu0 }
  0xf5   : > { %v443_v26 = vsub.f32 %v416_v25, %v1174_v24 }
  0xf7   : > { %451 = vmax.xlane.f32.xlu0 %v443_v26 }
  0xfa   : > { %v419_v27 = vpop.f32.mrf.mxu2 }
  0xfb   : > { %v444_v28 = vsub.f32 %v419_v27, %v1174_v24  ;;  %v428_v29 = vpop.f32.mrf.mxu3 }
  0xfc   : > { %v447_v30 = vsub.f32 %v428_v29, %v1174_v24 }
  0xfe   : > { %459 = vmax.xlane.f32.xlu2 %v447_v30 }
  0xff   : > { %453 = vmax.xlane.f32.xlu0 %v444_v28 }
 0x102   : > { %v422_v31 = vpop.f32.mrf.mxu2 }
 0x103   : > { %v445_v32 = vsub.f32 %v422_v31, %v1174_v24  ;;  %v431_v33 = vpop.f32.mrf.mxu3 }
 0x104   : > { %v448_v34 = vsub.f32 %v431_v33, %v1174_v24 }
 0x105   : > { %455 = vmax.xlane.f32.xlu1 %v445_v32 }
 0x106   : > { %461 = vmax.xlane.f32.xlu2 %v448_v34 }
 0x10a   : > { %v425_v35 = vpop.f32.mrf.mxu2 }
 0x10b   : > { %v446_v36 = vsub.f32 %v425_v35, %v1174_v24  ;;  %v434_v37 = vpop.f32.mrf.mxu3 }
 0x10c   : > { %v449_v38 = vsub.f32 %v434_v37, %v1174_v24 }
 0x10d   : > { %457 = vmax.xlane.f32.xlu1 %v446_v36 }
 0x113   : > { %v437_v47 = vpop.f32.mrf.mxu3 }
 0x114   : > { %v450_v49 = vsub.f32 %v437_v47, %v1174_v24 }
 0x115   : > { %463 = vmax.xlane.f32.xlu1 %v449_v38 }
 0x16a   : > { %v1604_v41 = vpop.xlane.xlu0 %451 }
 0x16b   : > { %vm469_vm0 = vcmp.ge.f32.partialorder %v443_v26, %v1604_v41 }
 0x16c   : > { %v477_v42 = vsel %vm469_vm0, %v1602_v40, 2147483647 }
 0x16d   : > { %v486_v43 = vshra.s32 %v477_v42, 16  ;;  %v485_v7 = vand.u32 65535, %v477_v42 }
 0x16f   : > { %v488_v44 = vcvt.s32.f32 %v486_v43  ;;  %v487_v9 = vcvt.s32.f32 %v485_v7 }
 0x171   : > { %v1608_v45 = vpop.xlane.xlu2 %459  ;;  %489 = vmin.xlane.f32.xlu0 %v488_v44 }
 0x172   : > { %v1610_v46 = vpop.xlane.xlu0 %453  ;;  %vm473_vm2 = vcmp.ge.f32.partialorder %v447_v30, %v1608_v45 }
 0x173   : > { %vm470_vm1 = vcmp.ge.f32.partialorder %v444_v28, %v1610_v46  ;;  %v481_v52 = vsel %vm473_vm2, %v1602_v40, 2147483647 }
 0x174   : > { %v478_v48 = vsel %vm470_vm1, %v1602_v40, 2147483647  ;;  %v542_v57 = vshra.s32 %v481_v52, 16 }
 0x175   : > { %v500_v50 = vshra.s32 %v478_v48, 16  ;;  %v499_v11 = vand.u32 65535, %v478_v48  ;;  %v698_v48 = vmul.f32 %v1569_v16, %v1569_v16  ;;  %v704_v16 = vmul.f32 %v1592_v22, %v1592_v22 }
 0x176   : > { %v544_v60 = vcvt.s32.f32 %v542_v57  ;;  %v705_v57 = vmul.f32 %v1597_v23, %v1597_v23  ;;  %v1388_v23 = vmov 1.0  }
 0x177   : > { %v502_v51 = vcvt.s32.f32 %v500_v50  ;;  %v501_v14 = vcvt.s32.f32 %v499_v11 }
 0x178   : > { %v1616_v53 = vpop.xlane.xlu1 %455 }
 0x179   : > { %v1618_v54 = vpop.xlane.xlu2 %461  ;;  %vm471_vm3 = vcmp.ge.f32.partialorder %v445_v32, %v1616_v53  ;;  %465 = vmax.xlane.f32.xlu0 %v450_v49  ;;  %503 = vmin.xlane.f32.xlu2 %v502_v51  ;;  %v541_v32 = vand.u32 65535, %v481_v52  ;;  %v701_v52 = vmul.f32 %v1589_v21, %v1589_v21 }
 0x17a   : > { %v479_v55 = vsel %vm471_vm3, %v1602_v40, 2147483647  ;;  %vm474_vm4 = vcmp.ge.f32.partialorder %v448_v34, %v1618_v54 }
 0x17b   : > { %v514_v56 = vshra.s32 %v479_v55, 16  ;;  %v482_v59 = vsel %vm474_vm4, %v1602_v40, 2147483647  ;;  %v513_v25 = vand.u32 65535, %v479_v55  ;;  %v543_v35 = vcvt.s32.f32 %v541_v32 }
 0x17c   : > { %v556_v62 = vshra.s32 %v482_v59, 16  ;;  %v555_v33 = vand.u32 65535, %v482_v59  ;;  %v699_v55 = vmul.f32 %v1572_v17, %v1572_v17 }
 0x17d   : > { %v516_v58 = vcvt.s32.f32 %v514_v56  ;;  %v515_v29 = vcvt.s32.f32 %v513_v25  ;;  %v702_v56 = vmul.f32 %v1575_v18, %v1575_v18 }
 0x17e   : > { %v558_v1 = vcvt.s32.f32 %v556_v62  ;;  %v557_v39 = vcvt.s32.f32 %v555_v33 }
 0x17f   : > { %517 = vmin.xlane.f32.xlu1 %v516_v58 }
 0x180   : > { %v1624_v61 = vpop.xlane.xlu1 %457 }
 0x181   : > { %vm472_vm5 = vcmp.ge.f32.partialorder %v446_v36, %v1624_v61  ;;  %545 = vmin.xlane.f32.xlu0 %v544_v60 }
 0x182   : > { %v480_v63 = vsel %vm472_vm5, %v1602_v40, 2147483647 }
 0x183   : > { %v528_v0 = vshra.s32 %v480_v63, 16  ;;  %v527_v34 = vand.u32 65535, %v480_v63 }
 0x185   : > { %v530_v2 = vcvt.s32.f32 %v528_v0  ;;  %v529_v42 = vcvt.s32.f32 %v527_v34 }
 0x187   : > { %559 = vmin.xlane.f32.xlu1 %v558_v1  ;;  %531 = vmin.xlane.f32.xlu2 %v530_v2 }
 0x188   : > { %v1628_v3 = vpop.xlane.xlu1 %463 }
 0x189   : > { %vm475_vm6 = vcmp.ge.f32.partialorder %v449_v38, %v1628_v3 }
 0x18a   : > { %v483_v4 = vsel %vm475_vm6, %v1602_v40, 2147483647 }
 0x18b   : > { %v570_v5 = vshra.s32 %v483_v4, 16  ;;  %v569_v47 = vand.u32 65535, %v483_v4 }
 0x18d   : > { %v572_v6 = vcvt.s32.f32 %v570_v5  ;;  %v571_v50 = vcvt.s32.f32 %v569_v47 }
 0x18f   : > { %573 = vmin.xlane.f32.xlu0 %v572_v6 }
 0x1e4   : > { %v1632_v8 = vpop.xlane.xlu0 %489 }
 0x1e5   : > { %vm491_vm7 = vcmp.eq.f32.partialorder %v488_v44, %v1632_v8  ;;  %v496_v21 = vcvt.f32.s32 %v1632_v8 }
 0x1e6   : > { %v492_v10 = vsel %vm491_vm7, %v487_v9, inf }
 0x1e7   : > { %493 = vmin.xlane.f32.xlu2 %v492_v10 }
 0x1ec   : > { %v1635_v12 = vpop.xlane.xlu2 %503  ;;  %v1637_v13 = vpop.xlane.xlu0 %465 }
 0x1ed   : > { %vm476_vm8 = vcmp.ge.f32.partialorder %v450_v49, %v1637_v13  ;;  %vm505_vm9 = vcmp.eq.f32.partialorder %v502_v51, %v1635_v12  ;;  %v510_v22 = vcvt.f32.s32 %v1635_v12 }
 0x1ee   : > { %v1642_v15 = vsel %vm476_vm8, %v1602_v40, 2147483647  ;;  %v506_v24 = vsel %vm505_vm9, %v501_v14, inf }
 0x1ef   : > { %507 = vmin.xlane.f32.xlu1 %v506_v24  ;;  %v584_v26 = vshra.s32 %v1642_v15, 16  ;;  %v583_v62 = vand.u32 65535, %v1642_v15  ;;  %v511_v63 = vshll.u32 %v510_v22, 16  ;;  %v700_v15 = vmul.f32 %v1581_v19, %v1581_v19 }
 0x1f1   : > { %v1645_v27 = vcvt.s32.f32 %v584_v26  ;;  %v585_v5 = vcvt.s32.f32 %v583_v62 }
 0x1f2   : > { %v1647_v28 = vpop.xlane.xlu1 %517 }
 0x1f3   : > { %587 = vmin.xlane.f32.xlu2 %v1645_v27  ;;  %vm519_vm10 = vcmp.eq.f32.partialorder %v516_v58, %v1647_v28  ;;  %v497_v58 = vshll.u32 %v496_v21, 16  ;;  %v724_v21 = vmul.f32 2.0, %v1616_v53 }
 0x1f4   : > { %v1651_v30 = vpop.xlane.xlu0 %545  ;;  %v520_v31 = vsel %vm519_vm10, %v515_v29, inf }
 0x1f5   : > { %521 = vmin.xlane.f32.xlu0 %v520_v31  ;;  %vm547_vm11 = vcmp.eq.f32.partialorder %v544_v60, %v1651_v30  ;;  %v552_v10 = vcvt.f32.s32 %v1651_v30 }
 0x1f6   : > { %v548_v38 = vsel %vm547_vm11, %v543_v35, inf }
 0x1f7   : > { %v553_v25 = vshll.u32 %v552_v10, 16 }
 0x1fa   : > { %v1654_v36 = vpop.xlane.xlu1 %559  ;;  %v1656_v37 = vpop.xlane.xlu2 %531 }
 0x1fb   : > { %549 = vmin.xlane.f32.xlu2 %v548_v38  ;;  %vm561_vm12 = vcmp.eq.f32.partialorder %v558_v1, %v1654_v36  ;;  %vm533_vm13 = vcmp.eq.f32.partialorder %v530_v2, %v1656_v37  ;;  %v524_v1 = vcvt.f32.s32 %v1647_v28  ;;  %v566_v12 = vcvt.f32.s32 %v1654_v36 }
 0x1fc   : > { %v562_v43 = vsel %vm561_vm12, %v557_v39, inf  ;;  %v534_v44 = vsel %vm533_vm13, %v529_v42, inf  ;;  %v538_v14 = vcvt.f32.s32 %v1656_v37  ;;  %v703_v36 = vmul.f32 %v1584_v20, %v1584_v20 }
 0x1fd   : > { %563 = vmin.xlane.f32.xlu0 %v562_v43  ;;  %535 = vmin.xlane.f32.xlu1 %v534_v44  ;;  %v525_v8 = vshll.u32 %v524_v1, 16 }
 0x1fe   : > { %v539_v30 = vshll.u32 %v538_v14, 16 }
 0x202   : > { %v1662_v49 = vpop.xlane.xlu0 %573 }
 0x203   : > { %vm575_vm14 = vcmp.eq.f32.partialorder %v572_v6, %v1662_v49  ;;  %v580_v35 = vcvt.f32.s32 %v1662_v49 }
 0x204   : > { %v576_v51 = vsel %vm575_vm14, %v571_v50, inf }
 0x205   : > { %706 = vadd.xlane.f32.xlu0 %v698_v48  ;;  %577 = vmin.xlane.f32.xlu1 %v576_v51  ;;  %v581_v38 = vshll.u32 %v580_v35, 16  ;;  %v723_v48 = vmul.f32 2.0, %v1610_v46 }
 0x20d   : > { %712 = vadd.xlane.f32.xlu0 %v701_v52  ;;  %708 = vadd.xlane.f32.xlu1 %v699_v55  ;;  %v722_v52 = vmul.f32 2.0, %v1604_v41  ;;  %v726_v41 = vmul.f32 2.0, %v1608_v45  ;;  %v728_v45 = vmul.f32 2.0, %v1628_v3 }
 0x215   : > { %718 = vadd.xlane.f32.xlu0 %v704_v16  ;;  %714 = vadd.xlane.f32.xlu1 %v702_v56 }
 0x21d   : > { %720 = vadd.xlane.f32.xlu1 %v705_v57 }
 0x25a   : > { %v494_v17 = vpop.xlane.xlu2 %493 }
 0x25b   : > { %v495_v59 = vcvt.f32.s32 %v494_v17  ;;  %v725_v17 = vmul.f32 2.0, %v1624_v61 }
 0x25d   : > { %v498_v18 = vadd.s32 %v497_v58, %v495_v59 }
 0x25f   : > { %671 = vst.msk [vmem:[%s1681_s28] sm:$0xff] %vm670_vm15, %v498_v18  ;;  %vm597_vm0 = vcmp.eq.s32.totalorder %v1602_v40, %v498_v18 }
 0x260   : > { %1042 = vmatmul.msk.f32.vlgmr.msra.gmra.mxu1 %vm597_vm0, %v1388_v23 }
 0x262   : > { %v508_v60 = vpop.xlane.xlu1 %507 }
 0x263   : > { %v509_v0 = vcvt.f32.s32 %v508_v60 }
 0x265   : > { %v512_v2 = vadd.s32 %v511_v63, %v509_v0 }
 0x266   : > { %v588_v4 = vpop.xlane.xlu2 %587 }
 0x267   : > { %672 = vst.msk [vmem:[%s1681_s28 + $0x8] sm:$0xff] %vm670_vm15, %v512_v2  ;;  %vm598_vm1 = vcmp.eq.s32.totalorder %v1602_v40, %v512_v2  ;;  %vm589_vm2 = vcmp.eq.f32.partialorder %v1645_v27, %v588_v4  ;;  %v567_v27 = vshll.u32 %v566_v12, 16  ;;  %v594_v44 = vcvt.f32.s32 %v588_v4 }
 0x268   : > { %1043 = vmatmul.msk.f32.gmra.mxu1 %vm598_vm1, %v1388_v23  ;;  %v522_v6 = vpop.xlane.xlu0 %521  ;;  %v590_v7 = vsel %vm589_vm2, %v585_v5, inf  ;;  %v727_v2 = vmul.f32 2.0, %v1618_v54 }
 0x269   : > { %v523_v9 = vcvt.f32.s32 %v522_v6  ;;  %591 = vmin.xlane.f32.xlu2 %v590_v7  ;;  %v595_v49 = vshll.u32 %v594_v44, 16 }
 0x26b   : > { %v526_v11 = vadd.s32 %v525_v8, %v523_v9  ;;  %v729_v8 = vmul.f32 2.0, %v1637_v13 }
 0x26d   : > { %673 = vst.msk [vmem:[%s1681_s28 + $0x10] sm:$0xff] %vm670_vm15, %v526_v11  ;;  %vm599_vm3 = vcmp.eq.s32.totalorder %v1602_v40, %v526_v11 }
 0x26e   : > { %v550_v24 = vpop.xlane.xlu2 %549 }
 0x26f   : > { %v551_v26 = vcvt.f32.s32 %v550_v24 }
 0x270   : > { %v536_v28 = vpop.xlane.xlu1 %535  ;;  %1044 = vmatmul.msk.f32.gmra.mxu1 %vm599_vm3, %v1388_v23  ;;  %v564_v29 = vpop.xlane.xlu0 %563 }
 0x271   : > { %v554_v31 = vadd.s32 %v553_v25, %v551_v26  ;;  %v537_v32 = vcvt.f32.s32 %v536_v28  ;;  %v565_v33 = vcvt.f32.s32 %v564_v29  ;;  %710 = vadd.xlane.f32.xlu2 %v700_v15 }
 0x273   : > { %675 = vst.msk [vmem:[%s1681_s28 + $0x20] sm:$0xff] %vm670_vm15, %v554_v31  ;;  %v540_v19 = vadd.s32 %v539_v30, %v537_v32  ;;  %v568_v34 = vadd.s32 %v567_v27, %v565_v33  ;;  %vm601_vm5 = vcmp.eq.s32.totalorder %v1602_v40, %v554_v31 }
 0x275   : > { %674 = vst.msk [vmem:[%s1681_s28 + $0x18] sm:$0xff] %vm670_vm15, %v540_v19  ;;  %vm600_vm4 = vcmp.eq.s32.totalorder %v1602_v40, %v540_v19  ;;  %vm602_vm6 = vcmp.eq.s32.totalorder %v1602_v40, %v568_v34 }
 0x276   : > { %676 = vst.msk [vmem:[%s1681_s28 + $0x28] sm:$0xff] %vm670_vm15, %v568_v34 }
 0x278   : > { %v578_v37 = vpop.xlane.xlu1 %577  ;;  %1045 = vmatmul.msk.f32.gmra.mxu1 %vm600_vm4, %v1388_v23  ;;  %v707_v20 = vpop.xlane.xlu0 %706 }
 0x279   : > { %v579_v39 = vcvt.f32.s32 %v578_v37  ;;  %716 = vadd.xlane.f32.xlu2 %v703_v36  ;;  %v730_v57 = vsub.f32 %v707_v20, %v722_v52 }
 0x27b   : > { %v582_v42 = vadd.s32 %v581_v38, %v579_v39  ;;  %v754_v18 = vsel %vm670_vm15, %v730_v57, 0.0 }
 0x27d   : > { %677 = vst.msk [vmem:[%s1681_s28 + $0x30] sm:$0xff] %vm670_vm15, %v582_v42  ;;  %vm603_vm7 = vcmp.eq.s32.totalorder %v1602_v40, %v582_v42 }
 0x280   : > { %1046 = vmatmul.msk.f32.gmra.mxu1 %vm601_vm5, %v1388_v23  ;;  %v709_v43 = vpop.xlane.xlu1 %708  ;;  %v713_v56 = vpop.xlane.xlu0 %712 }
 0x281   : > { %v731_v55 = vsub.f32 %v709_v43, %v723_v48  ;;  %v733_v22 = vsub.f32 %v713_v56, %v725_v17 }
 0x283   : > { %v755_v58 = vsel %vm670_vm15, %v731_v55, 0.0  ;;  %v759_v53 = vsel %vm670_vm15, %v733_v22, 0.0 }
 0x284   : > { %v756_v63 = vadd.f32 %v755_v58, %v754_v18 }
 0x288   : > { %1047 = vmatmul.msk.f32.gmra.mxu1 %vm602_vm6, %v1388_v23  ;;  %v715_v46 = vpop.xlane.xlu1 %714  ;;  %v719_v61 = vpop.xlane.xlu0 %718 }
 0x289   : > { %v736_v9 = vsub.f32 %v719_v61, %v728_v45 }
 0x28b   : > { %v765_v14 = vsel %vm670_vm15, %v736_v9, 0.0 }
 0x290   : > { %1048 = vmatmul.msk.f32.gmra.mxu1 %vm603_vm7, %v1388_v23  ;;  %v721_v5 = vpop.xlane.xlu1 %720 }
 0x291   : > { %v737_v12 = vsub.f32 %v721_v5, %v729_v8 }
 0x293   : > { %v767_v24 = vsel %vm670_vm15, %v737_v12, 0.0 }
 0x2dc   : > { %v592_v47 = vpop.xlane.xlu2 %591 }
 0x2dd   : > { %v593_v50 = vcvt.f32.s32 %v592_v47  ;;  %v638_v51 = vpop.f32.mrf.mxu1 }
 0x2de   : > { %662 = vst [vmem:[%s1726_s29] sm:$0xff] %v638_v51 }
 0x2df   : > { %v596_v16 = vadd.s32 %v595_v49, %v593_v50 }
 0x2e1   : > { %678 = vst.msk [vmem:[%s1681_s28 + $0x38] sm:$0xff] %vm670_vm15, %v596_v16  ;;  %vm604_vm8 = vcmp.eq.s32.totalorder %v1602_v40, %v596_v16  ;;  %v734_v40 = vsub.f32 %v715_v46, %v726_v41 }
 0x2e2   : > { %1049 = vmatmul.msk.f32.gmra.mxu1 %vm604_vm8, %v1388_v23 }
 0x2e3   : > { %v761_v4 = vsel %vm670_vm15, %v734_v40, 0.0 }
 0x2e4   : > { %v711_v59 = vpop.xlane.xlu2 %710 }
 0x2e5   : > { %v732_v60 = vsub.f32 %v711_v59, %v724_v21  ;;  %v641_v62 = vpop.f32.mrf.mxu1 }
 0x2e6   : > { %663 = vst [vmem:[%s1726_s29 + $0x8] sm:$0xff] %v641_v62 }
 0x2e7   : > { %v757_v23 = vsel %vm670_vm15, %v732_v60, 0.0 }
 0x2e8   : > { %v758_v0 = vadd.f32 %v757_v23, %v756_v63 }
 0x2ea   : > { %v760_v1 = vadd.f32 %v759_v53, %v758_v0 }
 0x2ec   : > { %v717_v6 = vpop.xlane.xlu2 %716  ;;  %v762_v7 = vadd.f32 %v761_v4, %v760_v1 }
 0x2ed   : > { %v735_v10 = vsub.f32 %v717_v6, %v727_v2  ;;  %v644_v11 = vpop.f32.mrf.mxu1 }
 0x2ee   : > { %664 = vst [vmem:[%s1726_s29 + $0x10] sm:$0xff] %v644_v11 }
 0x2ef   : > { %v763_v54 = vsel %vm670_vm15, %v735_v10, 0.0 }
 0x2f0   : > { %v764_v3 = vadd.f32 %v763_v54, %v762_v7 }
 0x2f2   : > { %v766_v15 = vadd.f32 %v765_v14, %v764_v3 }
 0x2f4   : > { %v768_v25 = vadd.f32 %v767_v24, %v766_v15 }
 0x2f5   : > { %v647_v13 = vpop.f32.mrf.mxu1 }
 0x2f6   : > { %665 = vst [vmem:[%s1726_s29 + $0x18] sm:$0xff] %v647_v13  ;;  %769 = vadd.xlane.f32.xlu2 %v768_v25 }
 0x2fd   : > { %v650_v26 = vpop.f32.mrf.mxu1 }
 0x2fe   : > { %666 = vst [vmem:[%s1726_s29 + $0x20] sm:$0xff] %v650_v26 }
 0x305   : > { %v653_v27 = vpop.f32.mrf.mxu1 }
 0x306   : > { %667 = vst [vmem:[%s1726_s29 + $0x28] sm:$0xff] %v653_v27 }
 0x30d   : > { %v656_v28 = vpop.f32.mrf.mxu1 }
 0x30e   : > { %668 = vst [vmem:[%s1726_s29 + $0x30] sm:$0xff] %v656_v28 }
 0x35f   : > { %v659_v29 = vpop.f32.mrf.mxu1 }
 0x360   : > { %669 = vst [vmem:[%s1726_s29 + $0x38] sm:$0xff] %v659_v29 }
 0x361   : > { %1292 = shalt.err (!%p1289_p0)
}
 0x362   : > { %s1389_s26 = smov 128   ;;  %s1390_s24 = smov 256  }
 0x363   : > { %s1391_s30 = smov 8   ;;  %s1841_s10 = sld [smem:[#allocation23_spill]] }
 0x364   : > { %1096 = dma.vmem_to_hbm [thread:$0]  (%p1477_p9), %s809_s25, 1024, %s811_s11, %s781_s15, %s1389_s26, %s1390_s24, %s1391_s30  }
 0x365   : > { %s361_s29 = scalar_lea.vmem [#allocation9], %s1531_s7  ;;  %s795_s17 = scalar_lea.sflag [#allocation10], %s1531_s7 }
 0x366   : > { %s829_s12 = sshll.u32 %s361_s29, 4  ;;  %s830_s12 = int_to_ptr.vmem [resolvable:$true] %s829_s12 }
 0x369   : > { %v770_v30 = vpop.xlane.xlu2 %769  ;;  %s827_s28 = scalar_lea.hbm %s1841_s10, %s1375_s21  ;;  %s1313_s21 = scalar_lea.hbm %s1841_s10, 2 }
 0x36a   : > { %v771_v31 = vrot.slane %v770_v30, 4  ;;  %s831_s14 = sshll.u32 %s827_s28, 4  ;;  %s832_s14 = int_to_ptr.hbm [resolvable:$true] %s831_s14 }
 0x36b   : > { %s1307_s25 = sshra.s32 %s832_s14, 4  ;;  %s1308_s25 = int_to_ptr.hbm [resolvable:$true] %s1307_s25 }
 0x36c   : > { %v772_v32 = vadd.f32 %v771_v31, %v770_v30  ;;  %s1309_s11 = scalar_lea.hbm %s1308_s25, 1  ;;  %p1314_p4 = scmp.lt.s32.totalorder %s1308_s25, %s1841_s10 }
 0x36d   : > { %p1310_p1 = scmp.ne.s32.totalorder %s1308_s25, %s1309_s11  ;;  %p1315_p5 = scmp.lt.s32.totalorder %s1313_s21, %s1309_s11 }
 0x36e   : > { %v773_v33 = vrot.slane %v772_v32, 2 }
 0x36f   : > { %p1311_p2 = pnand %p1310_p1, %p1477_p9  ;;  %p1316_p6 = por %p1315_p5, %p1314_p4 }
 0x370   : > { %v774_v19 = vadd.f32 %v773_v33, %v772_v32 }
 0x371   : > { %p1312_p3 = pneg %p1311_p2 }
 0x372   : > { %v775_v34 = vrot.slane %v774_v19, 1 }
 0x373   : > { %p1317_p7 = pnand %p1316_p6, %p1312_p3 }
 0x374   : > { %v776_v35 = vadd.f32 %v775_v34, %v774_v19 }
 0x376   : > { %1088 = vpush %v776_v35 }
 0x3a7   : > { %s1089_s13 = spop %1088 }
 0x3a8   : > { %v778_v36 = vstv %s1089_s13 }
 0x3a9   : > { %779 = vst [vmem:[%s361_s29] sm:$0x1] %v778_v36 }
 0x3aa   : > { %1320 = shalt.err (!%p1317_p7)
}
 0x3ab   : > { %1097 = dma.vmem_to_hbm [thread:$0]  (%p1477_p9), %s830_s12, 16, %s832_s14, %s795_s17  }
 0x3ac PF: > { %s1842_s7 = sld [smem:[#allocation15_spill]]  ;;  %p1111_p8 = pnand %p1022_p12, %p1484_p11 }
 0x3ad   : > { %s1844_s3 = sld [smem:[#allocation17_spill]] }
 0x3ae   : > { %p1112_p10 = pneg %p1111_p8 }
 0x3b2   : > { %s843_s5 = sand.u32 1, %s1842_s7  }
 0x3b3   : > { %s844_s18 = scalar_lea.sflag [#allocation4], %s843_s5 }
 0x3b4   : > { %1354 = dma.done.wait (%p1112_p10), %s844_s18, 1024  }
 0x3b5   : > { %1356 = vsyncadd (%p1112_p10), %s844_s18, 4294966272  ;;  %s866_s26 = scalar_lea.sflag [#allocation10], %s843_s5 }
 0x3b6   : > { %1358 = dma.done.wait (%p1112_p10), %s866_s26, 16  }
 0x3b7   : > { %1360 = vsyncadd (%p1112_p10), %s866_s26, 4294967280  ;;  %s28_s23 = sadd.s32 1, %s1844_s3   ;;  %s1845_s6 = sld [smem:[#allocation16_spill]] }
 0x3b8   : > { %p25_p13 = scmp.ge.s32.totalorder %s28_s23, 4   ;;  %s1846_s20 = sld [smem:[#allocation19_spill]] }
 0x3b9   : > { %s1847_s24 = sld [smem:[#allocation18_spill]]  ;;  %s1848_s18 = smov %s1367_s19 }
 0x3ba   : > { %s1850_s21 = smov %s1379_s22 }
 0x3bb   :  { %27 = sbr.rel (!%p25_p13) target bundleno = 14 (0xe), region = 130 }
 0x3bd   : > { %s1849_s19 = smov %s1845_s6 }
 0x3bf   : > { %s1851_s22 = smov %s1847_s24 }
 0x3c0   :  { %871 = vsyncpa [#allocation3], 1 }
 0x3c1   :  { %873 = vsyncpa [#allocation3 + $0x1], 1 }
 0x3c2   :  { %874 = vsyncpa [#allocation6], 1 }
 0x3c3   :  { %876 = vsyncpa [#allocation6 + $0x1], 1 }
 0x3c4   :  { %877 = vsyncpa [#allocation4], 1 }
 0x3c5   :  { %879 = vsyncpa [#allocation4 + $0x1], 1 }
 0x3c6   :  { %880 = vsyncpa [#allocation10], 1 }
 0x3c7   :  { %882 = vsyncpa [#allocation10 + $0x1], 1 }

</bundles_post_ra>
